<compile_context>
chip_gen: v6e
topology: v6e:2x2x1
jax: 0.10.0
libtpu: 0.0.40
codegen_flags: <defaults>
</compile_context>

<pallas_src>
import jax
import jax.numpy as jnp
from jax.experimental import pallas as pl
from jax.experimental.pallas import tpu as pltpu

LANE = 128
ROW_ALIGN = 16                        # covers f32 (8,128) and bf16 (16,128) sublane tiling
TARGET_TILE_BYTES = 4 * 1024 * 1024   # input bytes per pipeline buffer, per input
ACC_ROWS_MAX = 64                     # split-accumulator rows (independent vreg groups)


def _round_up(x, a):
    return (x + a - 1) // a * a


def _num_tensorcores():
    """Best-effort TensorCore count of the local chip (v7x -> 2, else 1)."""
    try:
        info = pltpu.get_tpu_info()
        for attr in ("num_cores", "core_count", "num_tensorcores", "tensorcore_count"):
            v = getattr(info, attr, None)
            if v:
                return int(v)
    except Exception:
        pass
    try:
        kind = jax.devices()[0].device_kind.lower()
        if "7x" in kind or "v7" in kind:
            return 2
    except Exception:
        pass
    return 1


def _make_bce_kernel(tile_rows, acc_rows, num_blocks, n_valid, has_phantom):
    tile_elems = tile_rows * LANE
    last_blk = num_blocks - 1
    valid_in_last = n_valid - last_blk * tile_elems      # Python int in [1, tile_elems]
    has_partial = valid_in_last != tile_elems
    folds = tile_rows // acc_rows

    def kernel(x_ref, y_ref, o_ref):
        k = pl.program_id(1)

        @pl.when(k == 0)
        def _():
            o_ref[...] = jnp.zeros_like(o_ref)

        x = x_ref[...].astype(jnp.float32)
        y = y_ref[...].astype(jnp.float32)
        # numerically stable BCE-with-logits, identical to PyTorch's formulation
        loss = jnp.maximum(x, 0.0) - x * y + jnp.log1p(jnp.exp(-jnp.abs(x)))

        def fold(vals):
            # `folds` independent (acc_rows, 128) vreg groups summed on the VPU;
            # no cross-lane XLU reduce, no single long dependent-add chain.
            part = vals.reshape(folds, acc_rows, LANE).sum(axis=0)
            o_ref[...] += part.reshape(1, acc_rows, LANE)

        if not (has_partial or has_phantom):
            fold(loss)
        else:
            blk = pl.program_id(0) * pl.num_programs(1) + k   # logical tile index

            @pl.when(blk < last_blk)
            def _():
                fold(loss)

            @pl.when(blk >= last_blk)
            def _():
                # last (possibly partial) tile and clamped phantom tiles.
                # Block-local indices stay < tile_elems, so int32 is always safe.
                idx = (jax.lax.broadcasted_iota(jnp.int32, (tile_rows, LANE), 0) * LANE
                       + jax.lax.broadcasted_iota(jnp.int32, (tile_rows, LANE), 1))
                valid = jnp.where(blk == last_blk,
                                  jnp.int32(valid_in_last), jnp.int32(0))
                # select (not multiply) so NaN/Inf from garbage/padded lanes vanish
                fold(jnp.where(idx < valid, loss, 0.0))

    return kernel


def bce_with_logits_loss(outputs, targets):
    assert outputs.shape == targets.shape
    n_valid = int(outputs.size)
    itemsize = jnp.dtype(outputs.dtype).itemsize

    rows = -(-n_valid // LANE)
    rows_padded = _round_up(rows, ROW_ALIGN)

    # lane-dense [rows_padded, 128] slab in the NATIVE dtype; only a tiny
    # (< ROW_ALIGN rows) tail pad, never a full-array pad or wrapper upcast.
    flat_x = jnp.ravel(outputs)
    flat_y = jnp.ravel(targets)
    pad = rows_padded * LANE - n_valid
    if pad:
        flat_x = jnp.pad(flat_x, (0, pad))
        flat_y = jnp.pad(flat_y, (0, pad))
    x2d = flat_x.reshape(rows_padded, LANE)
    y2d = flat_y.reshape(rows_padded, LANE)

    # bandwidth-proportional tile: ~TARGET_TILE_BYTES of input per pipeline buffer
    tile_rows = max(ROW_ALIGN, TARGET_TILE_BYTES // (LANE * itemsize))
    tile_rows = min(_round_up(tile_rows, ROW_ALIGN), rows_padded)

    acc_rows = ACC_ROWS_MAX
    while tile_rows % acc_rows:
        acc_rows //= 2

    num_blocks = -(-rows_padded // tile_rows)
    ncores = max(1, min(_num_tensorcores(), num_blocks))
    k_steps = -(-num_blocks // ncores)
    has_phantom = ncores * k_steps != num_blocks

    if has_phantom:
        def in_map(p, k):
            # clamp phantom tiles onto the last real tile; their contribution is
            # zeroed by the in-kernel block-local mask.
            return (jnp.minimum(p * k_steps + k, num_blocks - 1), 0)
    else:
        def in_map(p, k):
            return (p * k_steps + k, 0)

    kernel = _make_bce_kernel(tile_rows, acc_rows, num_blocks, n_valid, has_phantom)

    if ncores > 1:
        # genuinely shard the leading axis across TensorCores (v7x); plain
        # "parallel" is the safe fallback if CORE_PARALLEL is unavailable.
        dim_sem = (getattr(pltpu, "CORE_PARALLEL", "parallel"), "arbitrary")
    else:
        dim_sem = ("arbitrary", "arbitrary")

    # 2 inputs x 2 pipeline buffers x tile bytes; raise the scoped-VMEM limit so
    # the 16 MiB f32 footprint fits everywhere (v5e default scoped is 16 MiB).
    footprint = 4 * tile_rows * LANE * itemsize
    vmem_limit = int(max(32 << 20, footprint * 2))

    partials = pl.pallas_call(
        kernel,
        out_shape=jax.ShapeDtypeStruct((ncores, acc_rows, LANE), jnp.float32),
        grid_spec=pltpu.PrefetchScalarGridSpec(
            num_scalar_prefetch=0,
            grid=(ncores, k_steps),
            in_specs=[
                pl.BlockSpec((tile_rows, LANE), in_map),
                pl.BlockSpec((tile_rows, LANE), in_map),
            ],
            out_specs=pl.BlockSpec((1, acc_rows, LANE), lambda p, k: (p, 0, 0)),
        ),
        compiler_params=pltpu.CompilerParams(
            dimension_semantics=dim_sem,
            vmem_limit_bytes=vmem_limit,
        ),
    )(x2d, y2d)

    mean = jnp.sum(partials) / jnp.float32(n_valid)
    return mean.astype(outputs.dtype)


if __name__ == "__main__":
    key = jax.random.PRNGKey(0)
    k1, k2 = jax.random.split(key)

    # segmentation-style loss shapes: (B, C, H, W)
    shape = (2, 4, 16, 16)
    logits = jax.random.normal(k1, shape, dtype=jnp.float32)
    targets = (jax.random.uniform(k2, shape) > 0.5).astype(jnp.float32)

    loss = bce_with_logits_loss(logits, targets)
    loss = jax.block_until_ready(loss)

    # reference check in plain JAX
    ref = jnp.mean(
        jnp.maximum(logits, 0.0)
        - logits * targets
        + jnp.log1p(jnp.exp(-jnp.abs(logits)))
    )
    assert jnp.allclose(loss, ref, atol=1e-5, rtol=1e-5), (loss, ref)
    print("KERNEL_OK")
</pallas_src>

<mosaic_0001>
module attributes {stable_mosaic.version = 11 : i64} {
  func.func @kernel(%arg0: i32, %arg1: i32, %arg2: memref<16x128xf32, #tpu.memory_space<vmem>>, %arg3: memref<16x128xf32, #tpu.memory_space<vmem>>, %arg4: memref<1x16x128xf32, #tpu.memory_space<vmem>>) attributes {dimension_semantics = [#tpu.dimension_semantics<arbitrary>, #tpu.dimension_semantics<arbitrary>], iteration_bounds = array<i64: 1, 1>, scalar_prefetch = 0 : i64, scratch_operands = 0 : i64, tpu.core_type = #tpu.core_type<tc>, window_params = [{transform_indices = @transform_0, window_bounds = array<i64: 16, 128>}, {transform_indices = @transform_1, window_bounds = array<i64: 16, 128>}, {transform_indices = @transform_2, window_bounds = array<i64: 1, 16, 128>}]} {
    %c0_i32 = arith.constant 0 : i32
    %0 = arith.cmpi eq, %arg1, %c0_i32 : i32
    %1 = arith.extui %0 : i1 to i32
    %c0_i32_0 = arith.constant 0 : i32
    %2 = arith.cmpi ne, %1, %c0_i32_0 : i32
    scf.if %2 {
      %cst_12 = arith.constant 0.000000e+00 : f32
      %21 = vector.broadcast %cst_12 : f32 to vector<1x16x128xf32>
      %c0_13 = arith.constant 0 : index
      %c0_14 = arith.constant 0 : index
      %c0_15 = arith.constant 0 : index
      %22 = vector.load %arg4[%c0_13, %c0_14, %c0_15] : memref<1x16x128xf32, #tpu.memory_space<vmem>>, vector<1x16x128xf32>
      tpu.vector_store %arg4[%c0_13, %c0_14, %c0_15], %21 {strides = array<i32>} : memref<1x16x128xf32, #tpu.memory_space<vmem>>, vector<1x16x128xf32>,
    } else {
    }
    %c0 = arith.constant 0 : index
    %c0_1 = arith.constant 0 : index
    %3 = vector.load %arg2[%c0, %c0_1] : memref<16x128xf32, #tpu.memory_space<vmem>>, vector<16x128xf32>
    %c0_2 = arith.constant 0 : index
    %c0_3 = arith.constant 0 : index
    %4 = vector.load %arg3[%c0_2, %c0_3] : memref<16x128xf32, #tpu.memory_space<vmem>>, vector<16x128xf32>
    %cst = arith.constant 0.000000e+00 : f32
    %5 = vector.broadcast %cst : f32 to vector<16x128xf32>
    %6 = arith.maximumf %3, %5 : vector<16x128xf32>
    %7 = arith.mulf %3, %4 : vector<16x128xf32>
    %8 = arith.subf %6, %7 : vector<16x128xf32>
    %9 = math.absf %3 : vector<16x128xf32>
    %cst_4 = arith.constant 0.000000e+00 : f32
    %10 = vector.broadcast %cst_4 : f32 to vector<16x128xf32>
    %11 = arith.subf %10, %9 : vector<16x128xf32>
    %12 = math.exp %11 : vector<16x128xf32>
    %13 = math.log1p %12 : vector<16x128xf32>
    %14 = arith.addf %8, %13 : vector<16x128xf32>
    %15 = vector.shape_cast %14 : vector<16x128xf32> to vector<1x16x128xf32>
    %cst_5 = arith.constant dense<0.000000e+00> : vector<16x128xf32>
    %16 = vector.multi_reduction <add>, %15, %cst_5 [0] : vector<1x16x128xf32> to vector<16x128xf32>
    %c0_6 = arith.constant 0 : index
    %c0_7 = arith.constant 0 : index
    %c0_8 = arith.constant 0 : index
    %17 = vector.load %arg4[%c0_6, %c0_7, %c0_8] : memref<1x16x128xf32, #tpu.memory_space<vmem>>, vector<1x16x128xf32>
    %18 = vector.shape_cast %16 : vector<16x128xf32> to vector<1x16x128xf32>
    %19 = arith.addf %17, %18 : vector<1x16x128xf32>
    %c0_9 = arith.constant 0 : index
    %c0_10 = arith.constant 0 : index
    %c0_11 = arith.constant 0 : index
    %20 = vector.load %arg4[%c0_9, %c0_10, %c0_11] : memref<1x16x128xf32, #tpu.memory_space<vmem>>, vector<1x16x128xf32>
    tpu.vector_store %arg4[%c0_9, %c0_10, %c0_11], %19 {strides = array<i32>} : memref<1x16x128xf32, #tpu.memory_space<vmem>>, vector<1x16x128xf32>,
    return
  }
  func.func @transform_0(%arg0: i32, %arg1: i32) -> (i32, i32) {
    %c1_i32 = arith.constant 1 : i32
    %0 = arith.muli %arg0, %c1_i32 : i32
    %1 = arith.addi %0, %arg1 : i32
    %c0_i32 = arith.constant 0 : i32
    %c0_i32_0 = arith.constant 0 : i32
    return %1, %c0_i32 : i32, i32
  }
  func.func @transform_1(%arg0: i32, %arg1: i32) -> (i32, i32) {
    %c1_i32 = arith.constant 1 : i32
    %0 = arith.muli %arg0, %c1_i32 : i32
    %1 = arith.addi %0, %arg1 : i32
    %c0_i32 = arith.constant 0 : i32
    %c0_i32_0 = arith.constant 0 : i32
    return %1, %c0_i32 : i32, i32
  }
  func.func @transform_2(%arg0: i32, %arg1: i32) -> (i32, i32, i32) {
    %c0_i32 = arith.constant 0 : i32
    %c0_i32_0 = arith.constant 0 : i32
    %c0_i32_1 = arith.constant 0 : i32
    return %arg0, %c0_i32, %c0_i32_0 : i32, i32, i32
  }
}

</mosaic_0001>

<bundles_post_ra>
// kernel: tpu_custom_call.1
= control target key start
LH: loop header
LB: loop body
LE: loop exit
PB: predicated region body
PF: predicated region fallthrough
CT: control target
= control target key end

     0   :  { %7 = vsyncpa [#allocation3], 0  ;;  %s240_s0 = inlined_call_operand.hbm [shape: f32[16,128], index: 0, kind: input, shape index: {}]   ;;  %s241_s1 = inlined_call_operand.hbm [shape: f32[16,128], index: 1, kind: input, shape index: {}]   ;;  %s242_s2 = inlined_call_operand.hbm [shape: f32[1,16,128], index: 2, kind: output, shape index: {}]  }
   0x1   :  { %8 = vsyncpa [#allocation6], 0 }
   0x2   :  { %9 = vsyncpa [#allocation4], 0  ;;  %s202_s9 = smov [#allocation2]  }
   0x3   :  { %s19_s10 = sshll.u32 %s202_s9, 4  ;;  %s20_s10 = int_to_ptr.vmem [resolvable:$true] %s19_s10 }
   0x4   :  { %s144_s11 = scalar_lea.vmem %s20_s10, 256  ;;  %p149_p1 = scmp.lt.s32.totalorder %s20_s10, %s20_s10 }
   0x5   :  { %p145_p0 = scmp.ne.s32.totalorder %s20_s10, %s144_s11  ;;  %p150_p2 = scmp.lt.s32.totalorder %s144_s11, %s144_s11 }
   0x7   :  { %p151_p3 = por %p150_p2, %p149_p1 }
   0x9   :  { %p152_p4 = pnand %p151_p3, %p145_p0 }
   0xb   :  { %155 = shalt.err (!%p152_p4)
}
   0xc   :  { %s203_s12 = smov 128   ;;  %s204_s13 = smov 8  }
   0xd   :  { %25 = dma.hbm_to_vmem [thread:$0]  %s240_s0, 256, %s20_s10, [#allocation3], %s203_s12, %s203_s12, %s204_s13  }
   0xe   :  { %s205_s16 = smov [#allocation5]  }
   0xf   :  { %s35_s17 = sshll.u32 %s205_s16, 4  ;;  %s36_s17 = int_to_ptr.vmem [resolvable:$true] %s35_s17 }
  0x10   :  { %s164_s18 = scalar_lea.vmem %s36_s17, 256  ;;  %p169_p6 = scmp.lt.s32.totalorder %s36_s17, %s36_s17 }
  0x11   :  { %p165_p5 = scmp.ne.s32.totalorder %s36_s17, %s164_s18  ;;  %p170_p7 = scmp.lt.s32.totalorder %s164_s18, %s164_s18 }
  0x13   :  { %p171_p8 = por %p170_p7, %p169_p6 }
  0x15   :  { %p172_p9 = pnand %p171_p8, %p165_p5 }
  0x17   :  { %175 = shalt.err (!%p172_p9)
}
  0x18   :  { %41 = dma.hbm_to_vmem [thread:$0]  %s241_s1, 256, %s36_s17, [#allocation6], %s203_s12, %s203_s12, %s204_s13  }
  0x19   :  { %196 = dma.done.wait [#allocation3], 256  }
  0x1a   :  { %197 = vsyncadd [#allocation3], 4294967040 }
  0x1b   :  { %198 = dma.done.wait [#allocation6], 256  }
  0x1c   :  { %199 = vsyncadd [#allocation6], 4294967040  ;;  %v58_v0 = vld [vmem:[#allocation2] sm:$0xff]  ;;  %v59_v1 = vld [vmem:[#allocation2 + $0x8] sm:$0xff]  ;;  %s206_s0 = smov [#allocation7]  }
  0x1d   :  { %v68_v2 = vand.u32 2147483647, %v58_v0  ;;  %v69_v3 = vand.u32 2147483647, %v59_v1  ;;  %v60_v14 = vld [vmem:[#allocation5] sm:$0xff]  ;;  %v61_v15 = vld [vmem:[#allocation5 + $0x8] sm:$0xff] }
  0x1e   :  { %v62_v17 = vmax.f32 %v58_v0, 0.0  ;;  %v64_v18 = vmul.f32 %v60_v14, %v58_v0  ;;  %v63_v21 = vmax.f32 %v59_v1, 0.0  ;;  %v65_v22 = vmul.f32 %v61_v15, %v59_v1  ;;  %s109_s1 = sshll.u32 %s206_s0, 4  ;;  %s110_s1 = int_to_ptr.vmem [resolvable:$true] %s109_s1 }
  0x1f   :  { %v70_v4 = vsub.f32 0.0, %v68_v2  ;;  %v71_v5 = vsub.f32 0.0, %v69_v3  ;;  %s176_s21 = scalar_lea.vmem %s110_s1, 256  ;;  %p181_p11 = scmp.lt.s32.totalorder %s110_s1, %s110_s1 }
  0x20   :  { %v66_v26 = vsub.f32 %v62_v17, %v64_v18  ;;  %v67_v30 = vsub.f32 %v63_v21, %v65_v22  ;;  %p177_p10 = scmp.ne.s32.totalorder %s110_s1, %s176_s21  ;;  %p182_p12 = scmp.lt.s32.totalorder %s176_s21, %s176_s21 }
  0x21   :  { %v72_v6 = vmul.f32 1.442695, %v70_v4  ;;  %v74_v7 = vmul.f32 1.442695, %v71_v5 }
  0x22   :  { %p183_p13 = por %p182_p12, %p181_p11 }
  0x23   :  { %128 = vpow2.f32 %v72_v6 }
  0x24   :  { %130 = vpow2.f32 %v74_v7  ;;  %p184_p0 = pnand %p183_p13, %p177_p10 }
  0x30   :  { %v129_v8 = vpop.eup %128 }
  0x31   :  { %v131_v9 = vpop.eup %130  ;;  %v76_v10 = vadd.f32 1.0, %v129_v8  ;;  %v79_v12 = vmul.f32 -0.5, %v129_v8  ;;  %v82_v19 = vand.u32 2147483647, %v129_v8 }
  0x32   :  { %v85_v11 = vadd.f32 1.0, %v131_v9  ;;  %v88_v13 = vmul.f32 -0.5, %v131_v9  ;;  %v91_v23 = vand.u32 2147483647, %v131_v9 }
  0x33   :  { %132 = vlog2.f32 %v76_v10  ;;  %v80_v16 = vadd.f32 1.0, %v79_v12  ;;  %vm83_vm0 = vcmp.lt.f32.partialorder %v82_v19, 0.0004427343 }
  0x34   :  { %134 = vlog2.f32 %v85_v11  ;;  %v89_v20 = vadd.f32 1.0, %v88_v13  ;;  %vm92_vm1 = vcmp.lt.f32.partialorder %v91_v23, 0.0004427343 }
  0x35   :  { %v81_v24 = vmul.f32 %v129_v8, %v80_v16 }
  0x36   :  { %v90_v27 = vmul.f32 %v131_v9, %v89_v20 }
  0x40   :  { %v133_v25 = vpop.eup %132 }
  0x41   :  { %v135_v28 = vpop.eup %134  ;;  %v78_v29 = vmul.f32 0.6931472, %v133_v25 }
  0x42   :  { %v87_v31 = vmul.f32 0.6931472, %v135_v28 }
  0x43   :  { %v84_v32 = vsel %vm83_vm0, %v81_v24, %v78_v29 }
  0x44   :  { %v94_v33 = vadd.f32 %v84_v32, %v66_v26  ;;  %v93_v34 = vsel %vm92_vm1, %v90_v27, %v87_v31 }
  0x45   :  { %v95_v35 = vadd.f32 %v93_v34, %v67_v30 }
  0x46   :  { %102 = vst [vmem:[#allocation7] sm:$0xff] %v94_v33 }
  0x47   :  { %103 = vst [vmem:[#allocation7 + $0x8] sm:$0xff] %v95_v35 }
  0x48   :  { %187 = shalt.err (!%p184_p0)
}
  0x49   :  { %115 = dma.vmem_to_hbm [thread:$0]  %s110_s1, 256, %s242_s2, [#allocation4], %s203_s12, %s203_s12, %s204_s13  }
  0x4a   :  { %200 = dma.done.wait [#allocation4], 256  }
  0x4b   :  { %201 = vsyncadd [#allocation4], 4294967040 }
  0x4c   :  { %119 = vsyncpa [#allocation3], 1 }
  0x4d   :  { %120 = vsyncpa [#allocation6], 1 }
  0x4e   :  { %121 = vsyncpa [#allocation4], 1 }

</bundles_post_ra>
